<compile_context>
chip_gen: v7x
topology: tpu7x:2x2x1
jax: 0.10.0
libtpu: 0.0.40
codegen_flags: <defaults>
</compile_context>

<pallas_src>
import jax
import jax.numpy as jnp
from jax.experimental import pallas as pl
from jax.experimental.pallas import tpu as pltpu


def _layer_scale_kernel(x_ref, g_ref, o_ref):
    # x_ref: (TM, L) input block, g_ref: (1, L) f32 (resident), o_ref: (TM, L) f32
    o_ref[...] = x_ref[...].astype(jnp.float32) * g_ref[...]


def layer_scale(x, gamma):
    """y = x.float() * gamma.float(); x: (B, N, D), gamma: (D,) -> (B, N, D) f32."""
    B, N, D = x.shape
    assert gamma.shape == (D,)
    gamma_f32 = gamma.astype(jnp.float32)

    total = B * N * D

    # Choose a lane-dense 2D view (R, L) with L a multiple of 128 when possible.
    if D % 128 == 0:
        L = D
        g_row = gamma_f32
    elif (128 % D == 0) and (total % 128 == 0):
        # Small channel dim: tile gamma across 128 lanes and view x accordingly.
        L = 128
        g_row = jnp.tile(gamma_f32, L // D)
    else:
        # Fallback: keep D as the (full-extent) last dim.
        L = D
        g_row = gamma_f32

    R = total // L
    x2d = x.reshape(R, L)
    g2d = g_row.reshape(1, L)

    # Row tile: largest multiple of 8 whose double-buffered in+out tiles fit a
    # ~24 MiB VMEM budget (safe on v7x's 64 MiB physical / 32 MiB scoped default).
    in_bytes = jnp.dtype(x.dtype).itemsize
    bytes_per_row = L * (in_bytes + 4)          # input + f32 output
    budget = 24 * 1024 * 1024
    tm = budget // (2 * bytes_per_row)          # 2x for double buffering
    tm = max(8, min(2048, (tm // 8) * 8))
    tm = min(tm, R)                             # small arrays: single full block

    grid = (pl.cdiv(R, tm),)

    out2d = pl.pallas_call(
        _layer_scale_kernel,
        out_shape=jax.ShapeDtypeStruct((R, L), jnp.float32),
        grid=grid,
        in_specs=[
            pl.BlockSpec((tm, L), lambda i: (i, 0)),
            pl.BlockSpec((1, L), lambda i: (0, 0)),   # gamma: DMA'd once, resident
        ],
        out_specs=pl.BlockSpec((tm, L), lambda i: (i, 0)),
        compiler_params=pltpu.CompilerParams(
            dimension_semantics=("parallel",),
            vmem_limit_bytes=48 * 1024 * 1024,
        ),
    )(x2d, g2d)

    return out2d.reshape(B, N, D)


if __name__ == "__main__":
    key = jax.random.PRNGKey(0)
    B, N, D = 2, 8, 32
    init_values = 1e-5

    # deterministic parameter init, matching nn.Parameter(init_values * torch.ones(dim))
    gamma = init_values * jnp.ones((D,), dtype=jnp.float32)

    # input (bf16 to exercise the .float() upcast semantics)
    x = jax.random.normal(key, (B, N, D), dtype=jnp.float32).astype(jnp.bfloat16)

    out = layer_scale(x, gamma)
    out = jax.block_until_ready(out)

    # reference check
    ref = x.astype(jnp.float32) * gamma.astype(jnp.float32)
    assert out.dtype == jnp.float32
    assert out.shape == (B, N, D)
    assert jnp.allclose(out, ref, rtol=1e-6, atol=1e-6)

    print("KERNEL_OK")
</pallas_src>

<mosaic_0001>
module attributes {stable_mosaic.version = 11 : i64} {
  func.func @_layer_scale_kernel(%arg0: i32, %arg1: memref<4x128xbf16, #tpu.memory_space<vmem>>, %arg2: memref<1x128xf32, #tpu.memory_space<vmem>>, %arg3: memref<4x128xf32, #tpu.memory_space<vmem>>) attributes {dimension_semantics = [#tpu.dimension_semantics<parallel>], iteration_bounds = array<i64: 1>, scalar_prefetch = 0 : i64, scratch_operands = 0 : i64, tpu.core_type = #tpu.core_type<tc>, window_params = [{transform_indices = @transform_0, window_bounds = array<i64: 4, 128>}, {pipeline_mode = #tpu.pipeline_mode<synchronous>, transform_indices = @transform_1, window_bounds = array<i64: 1, 128>}, {transform_indices = @transform_2, window_bounds = array<i64: 4, 128>}]} {
    %c0 = arith.constant 0 : index
    %c0_0 = arith.constant 0 : index
    %0 = vector.load %arg1[%c0, %c0_0] : memref<4x128xbf16, #tpu.memory_space<vmem>>, vector<4x128xbf16>
    %1 = arith.extf %0 : vector<4x128xbf16> to vector<4x128xf32>
    %c0_1 = arith.constant 0 : index
    %c0_2 = arith.constant 0 : index
    %2 = vector.load %arg2[%c0_1, %c0_2] : memref<1x128xf32, #tpu.memory_space<vmem>>, vector<1x128xf32>
    %3 = vector.broadcast %2 : vector<1x128xf32> to vector<4x128xf32>
    %4 = arith.mulf %1, %3 : vector<4x128xf32>
    %c0_3 = arith.constant 0 : index
    %c0_4 = arith.constant 0 : index
    %5 = vector.load %arg3[%c0_3, %c0_4] : memref<4x128xf32, #tpu.memory_space<vmem>>, vector<4x128xf32>
    tpu.vector_store %arg3[%c0_3, %c0_4], %4 {strides = array<i32>} : memref<4x128xf32, #tpu.memory_space<vmem>>, vector<4x128xf32>,
    return
  }
  func.func @transform_0(%arg0: i32) -> (i32, i32) {
    %c0_i32 = arith.constant 0 : i32
    %c0_i32_0 = arith.constant 0 : i32
    return %arg0, %c0_i32 : i32, i32
  }
  func.func @transform_1(%arg0: i32) -> (i32, i32) {
    %c0_i32 = arith.constant 0 : i32
    %c0_i32_0 = arith.constant 0 : i32
    %c0_i32_1 = arith.constant 0 : i32
    return %c0_i32, %c0_i32_0 : i32, i32
  }
  func.func @transform_2(%arg0: i32) -> (i32, i32) {
    %c0_i32 = arith.constant 0 : i32
    %c0_i32_0 = arith.constant 0 : i32
    return %arg0, %c0_i32 : i32, i32
  }
}

</mosaic_0001>

<bundles_post_ra>
// kernel: tpu_custom_call.1
= control target key start
LH: loop header
LB: loop body
LE: loop exit
PB: predicated region body
PF: predicated region fallthrough
CT: control target
= control target key end

     0   :  { %7 = vsyncpa [#allocation3], 0  ;;  %s145_s0 = inlined_call_operand.hbm [shape: bf16[4,128], index: 0, kind: input, shape index: {}]   ;;  %s146_s1 = inlined_call_operand.vmem [shape: f32[1,128], index: 1, kind: input, shape index: {}]   ;;  %s147_s2 = inlined_call_operand.hbm [shape: f32[4,128], index: 2, kind: output, shape index: {}]  }
   0x1   :  { %8 = vsyncpa [#allocation4], 0  ;;  %s101_s9 = smov [#allocation2]   ;;  %s53_s13 = scalar_lea.hbm %s145_s0, 32 }
   0x2   :  { %s15_s10 = sshll.u32 %s101_s9, 4  ;;  %p54_p0 = scmp.ne.s32.totalorder %s145_s0, %s53_s13  ;;  %s16_s10 = int_to_ptr.vmem [resolvable:$true] %s15_s10 }
   0x3   :  { %p57_p1 = scmp.lt.u32.totalorder %s53_s13, %s145_s0 }
   0x5   :  { %p59_p2 = pnand %p57_p1, %p54_p0 }
   0x7   :  { %62 = shalt.err (!%p59_p2)
}
   0x8   :  { %s63_s18 = scalar_lea.vmem %s16_s10, 32  ;;  %p68_p4 = scmp.lt.s32.totalorder %s16_s10, %s16_s10 }
   0x9   :  { %p64_p3 = scmp.ne.s32.totalorder %s16_s10, %s63_s18  ;;  %p69_p5 = scmp.lt.s32.totalorder %s63_s18, %s63_s18 }
   0xb   :  { %p70_p6 = por %p69_p5, %p68_p4 }
   0xd   :  { %p71_p7 = pnand %p70_p6, %p64_p3 }
   0xf   :  { %74 = shalt.err (!%p71_p7)
}
  0x10   :  { %18 = dma.hbm_to_vmem [thread:$0]  %s145_s0, 32, %s16_s10, [#allocation3]  }
  0x11   :  { %97 = dma.done.wait [#allocation3], 32  }
  0x12   :  { %98 = vsyncadd [#allocation3], 4294967264  ;;  %v24_v0 = vld [vmem:[#allocation2] sm:$0x3]  ;;  %s102_s23 = smov [#allocation5]  }
  0x13   :  { %v50_v1 = vld [vmem:[%s146_s1] ss:$0 sm:$0xff]  ;;  %s41_s24 = sshll.u32 %s102_s23, 4  ;;  %v25_v2 = vunpack.c.l.bf16 %v24_v0  ;;  %s42_s24 = int_to_ptr.vmem [resolvable:$true] %s41_s24 }
  0x14   :  { %s75_s25 = scalar_lea.vmem %s42_s24, 64  ;;  %p80_p9 = scmp.lt.s32.totalorder %s42_s24, %s42_s24 }
  0x15   :  { %v33_v3 = vmul.f32 %v50_v1, %v25_v2  ;;  %p76_p8 = scmp.ne.s32.totalorder %s42_s24, %s75_s25  ;;  %p81_p10 = scmp.lt.s32.totalorder %s75_s25, %s75_s25 }
  0x17   :  { %34 = vst [vmem:[#allocation5] sm:$0xf] %v33_v3  ;;  %p82_p11 = por %p81_p10, %p80_p9 }
  0x19   :  { %p83_p12 = pnand %p82_p11, %p76_p8 }
  0x1b   :  { %86 = shalt.err (!%p83_p12)
}
  0x1c   :  { %s87_s27 = scalar_lea.hbm %s147_s2, 64 }
  0x1d   :  { %p88_p13 = scmp.ne.s32.totalorder %s147_s2, %s87_s27  ;;  %p91_p0 = scmp.lt.u32.totalorder %s87_s27, %s147_s2 }
  0x1f   :  { %p93_p1 = pnand %p91_p0, %p88_p13 }
  0x21   :  { %96 = shalt.err (!%p93_p1)
}
  0x22   :  { %44 = dma.vmem_to_hbm [thread:$0]  %s42_s24, 64, %s147_s2, [#allocation4]  }
  0x23   :  { %99 = dma.done.wait [#allocation4], 64  }
  0x24   :  { %100 = vsyncadd [#allocation4], 4294967232 }
  0x25   :  { %48 = vsyncpa [#allocation3], 1 }
  0x26   :  { %49 = vsyncpa [#allocation4], 1 }

</bundles_post_ra>
